<compile_context>
chip_gen: v7x
topology: tpu7x:2x2x1
jax: 0.10.0
libtpu: 0.0.40
codegen_flags: <defaults>
</compile_context>

<pallas_src>
import jax
import jax.numpy as jnp
from jax.experimental import pallas as pl
from jax.experimental.pallas import tpu as pltpu

HIDDEN = 128  # fixed by the module definition (feature_layer -> 128)
LANE = 128    # TPU lane width (output padded to this)


def _round_up(v, m):
    return (v + m - 1) // m * m


# ----------------------------- parameter setup ------------------------------

def _scale_noise(key, size):
    x = jax.random.normal(key, (size,), dtype=jnp.float32)
    return jnp.sign(x) * jnp.sqrt(jnp.abs(x))


def make_noisy_params(key, in_f, out_f, std_init=0.5):
    """Effective (W.T, b) of a NoisyLayer: W = mu + sigma * eps (noise folded)."""
    k_wmu, k_bmu, k_ein, k_eout = jax.random.split(key, 4)
    mu_range = 1.0 / (in_f ** 0.5)
    w_mu = jax.random.uniform(k_wmu, (out_f, in_f), jnp.float32,
                              minval=-mu_range, maxval=mu_range)
    w_sigma = jnp.full((out_f, in_f), std_init / in_f ** 0.5, jnp.float32)
    b_mu = jax.random.uniform(k_bmu, (out_f,), jnp.float32,
                              minval=-mu_range, maxval=mu_range)
    b_sigma = jnp.full((out_f,), std_init / in_f ** 0.5, jnp.float32)
    eps_in = _scale_noise(k_ein, in_f)
    eps_out = _scale_noise(k_eout, out_f)
    w_eff = w_mu + w_sigma * jnp.outer(eps_out, eps_in)   # (out, in)
    b_eff = b_mu + b_sigma * eps_out                      # (out,)
    return w_eff.T, b_eff[None, :]                        # (in, out), (1, out)


def make_linear_params(key, in_f, out_f):
    """nn.Linear with xavier_uniform_ weight and zero bias."""
    limit = (6.0 / (in_f + out_f)) ** 0.5
    w = jax.random.uniform(key, (out_f, in_f), jnp.float32,
                           minval=-limit, maxval=limit)
    return w.T, jnp.zeros((1, out_f), jnp.float32)


def make_network_params(key, input_dim, out_dim, atom_size):
    """Raw (unfused) parameters matching the PyTorch module semantics."""
    ks = jax.random.split(key, 5)
    wf, bf = make_linear_params(ks[0], input_dim, HIDDEN)
    wah, bah = make_noisy_params(ks[1], HIDDEN, HIDDEN)
    wa, ba = make_noisy_params(ks[2], HIDDEN, out_dim * atom_size)
    wvh, bvh = make_noisy_params(ks[3], HIDDEN, HIDDEN)
    wv, bv = make_noisy_params(ks[4], HIDDEN, atom_size)
    return dict(wf=wf, bf=bf, wah=wah, bah=bah, wa=wa, ba=ba,
                wvh=wvh, bvh=bvh, wv=wv, bv=bv)


def pack_params(raw, support, out_dim, atom_size, compute_dtype=jnp.bfloat16):
    """Fold the dueling combine / mean-subtraction / per-action reductions into
    constant matrices so the kernel is a pure matmul pipeline.

      P (A, A):         adv -> adv - mean_over_actions(adv)   (per atom)
      T (n, A):         val (B, n) -> tiled across actions (B, A)
      sg_w (A, 2*Opad): [support-weighted per-action sums | per-action group
                         sums], action axis zero/one padded to 128 lanes so the
                         kernel output store is lane-dense and padded lanes
                         never divide 0/0.
    """
    n = atom_size
    A = out_dim * atom_size
    out_pad = max(_round_up(out_dim, LANE), LANE)

    eye_n = jnp.eye(n, dtype=jnp.float32)
    P = jnp.kron(jnp.eye(out_dim, dtype=jnp.float32)
                 - jnp.ones((out_dim, out_dim), jnp.float32) / out_dim, eye_n)
    T = jnp.tile(eye_n, (1, out_dim))                              # (n, A)

    w_hid = jnp.concatenate([raw['wah'], raw['wvh']], axis=1)      # (128, 256)
    b_hid = jnp.concatenate([raw['bah'], raw['bvh']], axis=1)      # (1, 256)
    w_q = jnp.concatenate([raw['wa'] @ P, raw['wv'] @ T], axis=0)  # (256, A)
    b_q = raw['ba'] @ P + raw['bv'] @ T                            # (1, A)

    s_w = jnp.kron(jnp.eye(out_dim, dtype=jnp.float32),
                   support.astype(jnp.float32).reshape(n, 1))      # (A, O)
    g_w = jnp.kron(jnp.eye(out_dim, dtype=jnp.float32),
                   jnp.ones((n, 1), jnp.float32))                  # (A, O)
    # pad action lanes to 128: numerator pad = 0, denominator pad = 1 (no 0/0)
    s_w = jnp.concatenate(
        [s_w, jnp.zeros((A, out_pad - out_dim), jnp.float32)], axis=1)
    g_w = jnp.concatenate(
        [g_w, jnp.ones((A, out_pad - out_dim), jnp.float32)], axis=1)
    sg_w = jnp.concatenate([s_w, g_w], axis=1)                     # (A, 2*Opad)

    return dict(
        wf=raw['wf'].astype(compute_dtype), bf=raw['bf'],
        w_hid=w_hid.astype(compute_dtype), b_hid=b_hid,
        w_q=w_q.astype(compute_dtype), b_q=b_q,
        sg_w=sg_w,                     # epilogue constants stay f32 (exactness)
        out_pad=out_pad)


# --------------------------------- kernel -----------------------------------

def rainbow_kernel(x_ref, wf_ref, bf_ref, whid_ref, bhid_ref,
                   wq_ref, bq_ref, sgw_ref, out_ref):
    cd = wf_ref.dtype          # matmul input dtype (bf16/f32); accumulation f32
    out_pad = out_ref.shape[-1]

    # feature = relu(x @ Wf + bf)        (x already in compute dtype)
    f = jnp.maximum(
        jnp.dot(x_ref[...], wf_ref[...],
                preferred_element_type=jnp.float32) + bf_ref[...], 0.0)

    # fused advantage/value hidden layers: one (tile_b,128)x(128,256) MXU pass
    h = jnp.maximum(
        jnp.dot(f.astype(cd), whid_ref[...],
                preferred_element_type=jnp.float32) + bhid_ref[...], 0.0)

    # fused dueling head: value-add and action-mean-subtraction are folded into
    # w_q / b_q, so this single matmul yields q_atoms (tile_b, out_dim*atoms)
    q = jnp.dot(h.astype(cd), wq_ref[...],
                preferred_element_type=jnp.float32) + bq_ref[...]

    # lane-dense softmax-expectation epilogue:
    # softmax is shift-invariant within each atom group -> one row-wide max,
    # one exp over the whole slab, then BOTH per-action reductions (support-
    # weighted numerator | group-sum denominator) via a single constant matmul.
    p = jnp.exp(q - jnp.max(q, axis=-1, keepdims=True))
    nd = jnp.dot(p, sgw_ref[...], preferred_element_type=jnp.float32)
    num = nd[:, :out_pad]                              # tile-aligned lane slice
    den = jnp.maximum(nd[:, out_pad:], 1e-30)          # guard exp underflow
    # divide on the EUP slot; single full-width (tile_b, 128) store
    out_ref[...] = num * pl.reciprocal(den, approx=True)


# -------------------------------- wrapper ------------------------------------

def _choose_tiling(b, row_align, max_tile_b=1024):
    """Padding-minimal batch tiling; >=2 (even) tiles when there is enough work
    so both v7x TensorCores are used; tiles up to max_tile_b rows."""
    b_al = _round_up(b, row_align)
    n_tiles = max(pl.cdiv(b_al, max_tile_b),
                  2 if b_al >= 2 * row_align else 1)
    if n_tiles > 1:
        n_tiles = _round_up(n_tiles, 2)
    tile_b = _round_up(pl.cdiv(b_al, n_tiles), row_align)
    n_tiles = pl.cdiv(b_al, tile_b)
    if n_tiles > 1:
        n_tiles = _round_up(n_tiles, 2)
    return tile_b, tile_b * n_tiles, n_tiles


def rainbow_forward(x, packed, out_dim, atom_size, *, max_tile_b=1024):
    b, input_dim = x.shape
    A = out_dim * atom_size
    out_pad = packed['out_pad']
    cd = packed['wf'].dtype

    # cast x to the compute dtype in the wrapper (halves the streamed DMA)
    x = x.astype(cd)

    row_align = 8 if x.dtype.itemsize >= 4 else 16   # f32 / bf16 sublane pack
    tile_b, b_pad, n_tiles = _choose_tiling(b, row_align, max_tile_b)
    if b_pad != b:
        x = jnp.pad(x, ((0, b_pad - b), (0, 0)))
    grid = (n_tiles,)

    weight_args = (packed['wf'], packed['bf'], packed['w_hid'], packed['b_hid'],
                   packed['w_q'], packed['b_q'], packed['sg_w'])

    in_specs = [pl.BlockSpec((tile_b, input_dim), lambda i: (i, 0))]
    # weights / constants: full-array blocks, constant index map -> VMEM resident
    in_specs += [pl.BlockSpec(tuple(w.shape), lambda i: (0, 0))
                 for w in weight_args]
    out_spec = pl.BlockSpec((tile_b, out_pad), lambda i: (i, 0))

    flops = 2 * b_pad * (input_dim * HIDDEN + HIDDEN * 2 * HIDDEN
                         + 2 * HIDDEN * A + A * 2 * out_pad)
    bytes_accessed = (int(x.size) * x.dtype.itemsize
                      + sum(int(w.size) * w.dtype.itemsize for w in weight_args)
                      + b_pad * out_pad * 4)

    out = pl.pallas_call(
        rainbow_kernel,
        out_shape=jax.ShapeDtypeStruct((b_pad, out_pad), jnp.float32),
        grid=grid,
        in_specs=in_specs,
        out_specs=out_spec,
        compiler_params=pltpu.CompilerParams(
            dimension_semantics=("parallel",),        # batch tiles -> both TCs
            vmem_limit_bytes=32 * 1024 * 1024,
        ),
        cost_estimate=pl.CostEstimate(
            flops=flops,
            transcendentals=b_pad * (A + out_pad),
            bytes_accessed=bytes_accessed),
    )(x, *weight_args)
    return out[:b, :out_dim]


# ------------------------------ pure-JAX references --------------------------

def reference_forward(x, raw, support, out_dim, atom_size):
    """Straight transcription of the PyTorch module (unfused, f32)."""
    f = jax.nn.relu(x @ raw['wf'] + raw['bf'])
    ah = jax.nn.relu(f @ raw['wah'] + raw['bah'])
    vh = jax.nn.relu(f @ raw['wvh'] + raw['bvh'])
    adv = (ah @ raw['wa'] + raw['ba']).reshape(-1, out_dim, atom_size)
    val = (vh @ raw['wv'] + raw['bv']).reshape(-1, 1, atom_size)
    q = val + adv - adv.mean(axis=1, keepdims=True)
    dist = jax.nn.softmax(q, axis=-1)
    return jnp.sum(dist * support, axis=2)


def packed_reference_forward(x, p, out_dim):
    """Mirror of the kernel math (same packed / quantized weights) in plain JAX."""
    cd = p['wf'].dtype
    out_pad = p['out_pad']
    f = jax.nn.relu(jnp.dot(x.astype(cd), p['wf'],
                            preferred_element_type=jnp.float32) + p['bf'])
    h = jax.nn.relu(jnp.dot(f.astype(cd), p['w_hid'],
                            preferred_element_type=jnp.float32) + p['b_hid'])
    q = jnp.dot(h.astype(cd), p['w_q'],
                preferred_element_type=jnp.float32) + p['b_q']
    e = jnp.exp(q - jnp.max(q, axis=-1, keepdims=True))
    nd = jnp.dot(e, p['sg_w'], preferred_element_type=jnp.float32)
    num = nd[:, :out_pad]
    den = jnp.maximum(nd[:, out_pad:], 1e-30)
    return (num / den)[:, :out_dim]


# ----------------------------------- main ------------------------------------

if __name__ == "__main__":
    batch = 2
    input_dim = 16
    out_dim = 4
    atom_size = 8

    key = jax.random.PRNGKey(0)
    k_x, k_p = jax.random.split(key)

    x = jax.random.normal(k_x, (batch, input_dim), dtype=jnp.float32)
    raw = make_network_params(k_p, input_dim, out_dim, atom_size)
    support = jnp.linspace(-10.0, 10.0, atom_size, dtype=jnp.float32)

    ref = reference_forward(x, raw, support, out_dim, atom_size)

    # f32 weights: check against the module reference (tolerance accounts for
    # the EUP approx reciprocal in the epilogue; values lie in [-10, 10]).
    p32 = pack_params(raw, support, out_dim, atom_size, jnp.float32)
    out32 = jax.block_until_ready(rainbow_forward(x, p32, out_dim, atom_size))
    assert out32.shape == (batch, out_dim)
    assert bool(jnp.all(jnp.isfinite(out32)))
    assert jnp.allclose(out32, ref, rtol=1e-3, atol=1e-2), (out32, ref)

    # bf16 weights (MXU-native path on all generations, f32 accumulation):
    # tight check against an identically-quantized pure-JAX mirror, plus a
    # loose one-off check against the module reference.
    p16 = pack_params(raw, support, out_dim, atom_size, jnp.bfloat16)
    out16 = jax.block_until_ready(rainbow_forward(x, p16, out_dim, atom_size))
    ref16 = packed_reference_forward(x, p16, out_dim)
    assert jnp.allclose(out16, ref16, rtol=2e-2, atol=2e-2), (out16, ref16)
    assert float(jnp.max(jnp.abs(out16 - ref))) < 0.5, (out16, ref)

    print("KERNEL_OK")
</pallas_src>

<mosaic_0001>
module attributes {stable_mosaic.version = 11 : i64} {
  func.func @rainbow_kernel(%arg0: i32, %arg1: memref<8x16xf32, #tpu.memory_space<vmem>>, %arg2: memref<16x128xf32, #tpu.memory_space<vmem>>, %arg3: memref<1x128xf32, #tpu.memory_space<vmem>>, %arg4: memref<128x256xf32, #tpu.memory_space<vmem>>, %arg5: memref<1x256xf32, #tpu.memory_space<vmem>>, %arg6: memref<256x32xf32, #tpu.memory_space<vmem>>, %arg7: memref<1x32xf32, #tpu.memory_space<vmem>>, %arg8: memref<32x256xf32, #tpu.memory_space<vmem>>, %arg9: memref<8x128xf32, #tpu.memory_space<vmem>>) attributes {dimension_semantics = [#tpu.dimension_semantics<parallel>], iteration_bounds = array<i64: 1>, scalar_prefetch = 0 : i64, scratch_operands = 0 : i64, tpu.core_type = #tpu.core_type<tc>, window_params = [{transform_indices = @transform_0, window_bounds = array<i64: 8, 16>}, {pipeline_mode = #tpu.pipeline_mode<synchronous>, transform_indices = @transform_1, window_bounds = array<i64: 16, 128>}, {pipeline_mode = #tpu.pipeline_mode<synchronous>, transform_indices = @transform_2, window_bounds = array<i64: 1, 128>}, {pipeline_mode = #tpu.pipeline_mode<synchronous>, transform_indices = @transform_3, window_bounds = array<i64: 128, 256>}, {pipeline_mode = #tpu.pipeline_mode<synchronous>, transform_indices = @transform_4, window_bounds = array<i64: 1, 256>}, {pipeline_mode = #tpu.pipeline_mode<synchronous>, transform_indices = @transform_5, window_bounds = array<i64: 256, 32>}, {pipeline_mode = #tpu.pipeline_mode<synchronous>, transform_indices = @transform_6, window_bounds = array<i64: 1, 32>}, {pipeline_mode = #tpu.pipeline_mode<synchronous>, transform_indices = @transform_7, window_bounds = array<i64: 32, 256>}, {transform_indices = @transform_8, window_bounds = array<i64: 8, 128>}]} {
    %c0 = arith.constant 0 : index
    %c0_0 = arith.constant 0 : index
    %0 = vector.load %arg1[%c0, %c0_0] : memref<8x16xf32, #tpu.memory_space<vmem>>, vector<8x16xf32>
    %c0_1 = arith.constant 0 : index
    %c0_2 = arith.constant 0 : index
    %1 = vector.load %arg2[%c0_1, %c0_2] : memref<16x128xf32, #tpu.memory_space<vmem>>, vector<16x128xf32>
    %cst = arith.constant dense<0.000000e+00> : vector<8x128xf32>
    %2 = tpu.matmul %0, %1, %cst {dimension_numbers = #tpu.dot_dimension_numbers<[1], [0], [0], [1], [0, 0, 1, 1], [], []>} : vector<8x16xf32>, vector<16x128xf32>, vector<8x128xf32> -> vector<8x128xf32>
    %c0_3 = arith.constant 0 : index
    %c0_4 = arith.constant 0 : index
    %3 = vector.load %arg3[%c0_3, %c0_4] : memref<1x128xf32, #tpu.memory_space<vmem>>, vector<1x128xf32>
    %4 = vector.broadcast %3 : vector<1x128xf32> to vector<8x128xf32>
    %5 = arith.addf %2, %4 : vector<8x128xf32>
    %cst_5 = arith.constant 0.000000e+00 : f32
    %6 = vector.broadcast %cst_5 : f32 to vector<8x128xf32>
    %7 = arith.maximumf %5, %6 : vector<8x128xf32>
    %c0_6 = arith.constant 0 : index
    %c0_7 = arith.constant 0 : index
    %8 = vector.load %arg4[%c0_6, %c0_7] : memref<128x256xf32, #tpu.memory_space<vmem>>, vector<128x256xf32>
    %cst_8 = arith.constant dense<0.000000e+00> : vector<8x256xf32>
    %9 = tpu.matmul %7, %8, %cst_8 {dimension_numbers = #tpu.dot_dimension_numbers<[1], [0], [0], [1], [0, 0, 1, 1], [], []>} : vector<8x128xf32>, vector<128x256xf32>, vector<8x256xf32> -> vector<8x256xf32>
    %c0_9 = arith.constant 0 : index
    %c0_10 = arith.constant 0 : index
    %10 = vector.load %arg5[%c0_9, %c0_10] : memref<1x256xf32, #tpu.memory_space<vmem>>, vector<1x256xf32>
    %11 = vector.broadcast %10 : vector<1x256xf32> to vector<8x256xf32>
    %12 = arith.addf %9, %11 : vector<8x256xf32>
    %cst_11 = arith.constant 0.000000e+00 : f32
    %13 = vector.broadcast %cst_11 : f32 to vector<8x256xf32>
    %14 = arith.maximumf %12, %13 : vector<8x256xf32>
    %c0_12 = arith.constant 0 : index
    %c0_13 = arith.constant 0 : index
    %15 = vector.load %arg6[%c0_12, %c0_13] : memref<256x32xf32, #tpu.memory_space<vmem>>, vector<256x32xf32>
    %cst_14 = arith.constant dense<0.000000e+00> : vector<8x32xf32>
    %16 = tpu.matmul %14, %15, %cst_14 {dimension_numbers = #tpu.dot_dimension_numbers<[1], [0], [0], [1], [0, 0, 1, 1], [], []>} : vector<8x256xf32>, vector<256x32xf32>, vector<8x32xf32> -> vector<8x32xf32>
    %c0_15 = arith.constant 0 : index
    %c0_16 = arith.constant 0 : index
    %17 = vector.load %arg7[%c0_15, %c0_16] : memref<1x32xf32, #tpu.memory_space<vmem>>, vector<1x32xf32>
    %18 = vector.broadcast %17 : vector<1x32xf32> to vector<8x32xf32>
    %19 = arith.addf %16, %18 : vector<8x32xf32>
    %cst_17 = arith.constant dense<0xFF800000> : vector<8xf32>
    %20 = vector.multi_reduction <maximumf>, %19, %cst_17 [1] : vector<8x32xf32> to vector<8xf32>
    %21 = vector.shape_cast %20 : vector<8xf32> to vector<8x1xf32>
    %22 = vector.broadcast %21 : vector<8x1xf32> to vector<8x32xf32>
    %23 = arith.subf %19, %22 : vector<8x32xf32>
    %24 = math.exp %23 : vector<8x32xf32>
    %c0_18 = arith.constant 0 : index
    %c0_19 = arith.constant 0 : index
    %25 = vector.load %arg8[%c0_18, %c0_19] : memref<32x256xf32, #tpu.memory_space<vmem>>, vector<32x256xf32>
    %cst_20 = arith.constant dense<0.000000e+00> : vector<8x256xf32>
    %26 = tpu.matmul %24, %25, %cst_20 {dimension_numbers = #tpu.dot_dimension_numbers<[1], [0], [0], [1], [0, 0, 1, 1], [], []>} : vector<8x32xf32>, vector<32x256xf32>, vector<8x256xf32> -> vector<8x256xf32>
    %27 = vector.extract_strided_slice %26 {offsets = [0, 0], sizes = [8, 128], strides = [1, 1]} : vector<8x256xf32> to vector<8x128xf32>
    %28 = vector.extract_strided_slice %26 {offsets = [0, 128], sizes = [8, 128], strides = [1, 1]} : vector<8x256xf32> to vector<8x128xf32>
    %cst_21 = arith.constant 1.000000e-30 : f32
    %29 = vector.broadcast %cst_21 : f32 to vector<8x128xf32>
    %30 = arith.maximumf %28, %29 : vector<8x128xf32>
    %31 = tpu.reciprocal %30 {approx = true} : vector<8x128xf32> -> vector<8x128xf32>
    %32 = arith.mulf %27, %31 : vector<8x128xf32>
    %c0_22 = arith.constant 0 : index
    %c0_23 = arith.constant 0 : index
    %33 = vector.load %arg9[%c0_22, %c0_23] : memref<8x128xf32, #tpu.memory_space<vmem>>, vector<8x128xf32>
    tpu.vector_store %arg9[%c0_22, %c0_23], %32 {strides = array<i32>} : memref<8x128xf32, #tpu.memory_space<vmem>>, vector<8x128xf32>,
    return
  }
  func.func @transform_0(%arg0: i32) -> (i32, i32) {
    %c0_i32 = arith.constant 0 : i32
    %c0_i32_0 = arith.constant 0 : i32
    return %arg0, %c0_i32 : i32, i32
  }
  func.func @transform_1(%arg0: i32) -> (i32, i32) {
    %c0_i32 = arith.constant 0 : i32
    %c0_i32_0 = arith.constant 0 : i32
    %c0_i32_1 = arith.constant 0 : i32
    return %c0_i32, %c0_i32_0 : i32, i32
  }
  func.func @transform_2(%arg0: i32) -> (i32, i32) {
    %c0_i32 = arith.constant 0 : i32
    %c0_i32_0 = arith.constant 0 : i32
    %c0_i32_1 = arith.constant 0 : i32
    return %c0_i32, %c0_i32_0 : i32, i32
  }
  func.func @transform_3(%arg0: i32) -> (i32, i32) {
    %c0_i32 = arith.constant 0 : i32
    %c0_i32_0 = arith.constant 0 : i32
    %c0_i32_1 = arith.constant 0 : i32
    return %c0_i32, %c0_i32_0 : i32, i32
  }
  func.func @transform_4(%arg0: i32) -> (i32, i32) {
    %c0_i32 = arith.constant 0 : i32
    %c0_i32_0 = arith.constant 0 : i32
    %c0_i32_1 = arith.constant 0 : i32
    return %c0_i32, %c0_i32_0 : i32, i32
  }
  func.func @transform_5(%arg0: i32) -> (i32, i32) {
    %c0_i32 = arith.constant 0 : i32
    %c0_i32_0 = arith.constant 0 : i32
    %c0_i32_1 = arith.constant 0 : i32
    return %c0_i32, %c0_i32_0 : i32, i32
  }
  func.func @transform_6(%arg0: i32) -> (i32, i32) {
    %c0_i32 = arith.constant 0 : i32
    %c0_i32_0 = arith.constant 0 : i32
    %c0_i32_1 = arith.constant 0 : i32
    return %c0_i32, %c0_i32_0 : i32, i32
  }
  func.func @transform_7(%arg0: i32) -> (i32, i32) {
    %c0_i32 = arith.constant 0 : i32
    %c0_i32_0 = arith.constant 0 : i32
    %c0_i32_1 = arith.constant 0 : i32
    return %c0_i32, %c0_i32_0 : i32, i32
  }
  func.func @transform_8(%arg0: i32) -> (i32, i32) {
    %c0_i32 = arith.constant 0 : i32
    %c0_i32_0 = arith.constant 0 : i32
    return %arg0, %c0_i32 : i32, i32
  }
}

</mosaic_0001>

<bundles_post_ra>
// kernel: tpu_custom_call.1
= control target key start
LH: loop header
LB: loop body
LE: loop exit
PB: predicated region body
PF: predicated region fallthrough
CT: control target
= control target key end

     0   :  { %13 = vsyncpa [#allocation3], 0  ;;  %s955_s0 = inlined_call_operand.vmem [shape: f32[8,16], index: 0, kind: input, shape index: {}]   ;;  %s956_s1 = inlined_call_operand.hbm [shape: f32[16,128], index: 1, kind: input, shape index: {}]   ;;  %s957_s2 = inlined_call_operand.vmem [shape: f32[1,128], index: 2, kind: input, shape index: {}]   ;;  %s958_s3 = inlined_call_operand.vmem [shape: f32[128,256], index: 3, kind: input, shape index: {}]   ;;  %s959_s4 = inlined_call_operand.vmem [shape: f32[1,256], index: 4, kind: input, shape index: {}]   ;;  %s960_s5 = inlined_call_operand.vmem [shape: f32[256,32], index: 5, kind: input, shape index: {}]   ;;  %s961_s6 = inlined_call_operand.vmem [shape: f32[1,32], index: 6, kind: input, shape index: {}]   ;;  %s962_s7 = inlined_call_operand.vmem [shape: f32[32,256], index: 7, kind: input, shape index: {}]   ;;  %s963_s8 = inlined_call_operand.hbm [shape: f32[8,128], index: 8, kind: output, shape index: {}]  }
   0x1   :  { %14 = vsyncpa [#allocation4], 0  ;;  %s646_s27 = smov [#allocation2]   ;;  %s598_s9 = scalar_lea.hbm %s956_s1, 256 }
   0x2   :  { %s22_s28 = sshll.u32 %s646_s27, 4  ;;  %p599_p0 = scmp.ne.s32.totalorder %s956_s1, %s598_s9  ;;  %s23_s28 = int_to_ptr.vmem [resolvable:$true] %s22_s28 }
   0x3   :  { %p602_p1 = scmp.lt.u32.totalorder %s598_s9, %s956_s1 }
   0x5   :  { %p604_p2 = pnand %p602_p1, %p599_p0 }
   0x7   :  { %607 = shalt.err (!%p604_p2)
}
   0x8   :  { %s608_s14 = scalar_lea.vmem %s23_s28, 256  ;;  %p613_p4 = scmp.lt.s32.totalorder %s23_s28, %s23_s28 }
   0x9   :  { %p609_p3 = scmp.ne.s32.totalorder %s23_s28, %s608_s14  ;;  %p614_p5 = scmp.lt.s32.totalorder %s608_s14, %s608_s14 }
   0xb   :  { %p615_p6 = por %p614_p5, %p613_p4 }
   0xd   :  { %p616_p7 = pnand %p615_p6, %p609_p3 }
   0xf   :  { %619 = shalt.err (!%p616_p7)
}
  0x10   :  { %s647_s15 = smov 128   ;;  %s648_s16 = smov 8  }
  0x11   :  { %28 = dma.hbm_to_vmem [thread:$0]  %s956_s1, 256, %s23_s28, [#allocation3], %s647_s15, %s647_s15, %s648_s16  }
  0x12   :  { %642 = dma.done.wait [#allocation3], 256  }
  0x13   :  { %643 = vsyncadd [#allocation3], 4294967040  ;;  %v649_v0 = vmov 0.0|0.0   ;;  %vm650_vm0 = vmmov 0   ;;  %v651_v1 = vmov 0.0   ;;  %v45_v2 = vld [vmem:[#allocation2] sm:$0xff] }
  0x14   :  { %512 = vmatprep.subr.bf16.mxu0 %v649_v0  ;;  %509 = vmatprep.mubr.msk.f32.mxu0 %vm650_vm0, %v651_v1  ;;  %v46_v3 = vld [vmem:[#allocation2 + $0x8] sm:$0xff]  ;;  %v44_v5 = vld [vmem:[%s955_s0] sm:$0xff]  ;;  %v132_v7 = vld [vmem:[%s958_s3 + $0x18] sm:$0xff]  ;;  %vm54_vm1 = vcmask 130048   ;;  %vm355_vm2 = vcmask 261120   ;;  %s652_s20 = smov [#allocation5]  }
  0x15   :  { %237 = vmatprep.mubr.f32.mxu1 %v651_v1  ;;  %v513_v4 = vpack.c.bf16 %v46_v3, %v45_v2  ;;  %v130_v6 = vld [vmem:[%s958_s3 + $0x8] sm:$0xff]  ;;  %v129_v8 = vld [vmem:[%s958_s3] sm:$0xff]  ;;  %v131_v10 = vld [vmem:[%s958_s3 + $0x10] sm:$0xff] }
  0x16   :  { %v515_v9 = vpack.c.bf16 %v132_v7, %v130_v6  ;;  %v134_v11 = vld [vmem:[%s958_s3 + $0x28] sm:$0xff]  ;;  %v136_v12 = vld [vmem:[%s958_s3 + $0x38] sm:$0xff]  ;;  %v517_v13 = vpack.c.bf16 %v131_v10, %v129_v8  ;;  %v133_v15 = vld [vmem:[%s958_s3 + $0x20] sm:$0xff] }
  0x17   :  { %514 = vmatpush3.bf16.msra.mxu0 %v513_v4  ;;  %v519_v14 = vpack.c.bf16 %v136_v12, %v134_v11  ;;  %v135_v16 = vld [vmem:[%s958_s3 + $0x30] sm:$0xff]  ;;  %v138_v17 = vld [vmem:[%s958_s3 + $0x48] sm:$0xff]  ;;  %v140_v18 = vld [vmem:[%s958_s3 + $0x58] sm:$0xff] }
  0x18   :  { %516 = vmatprep.subr.bf16.mxu1 %v515_v9  ;;  %v521_v19 = vpack.c.bf16 %v135_v16, %v133_v15  ;;  %v523_v20 = vpack.c.bf16 %v140_v18, %v138_v17  ;;  %v137_v21 = vld [vmem:[%s958_s3 + $0x40] sm:$0xff]  ;;  %v139_v22 = vld [vmem:[%s958_s3 + $0x50] sm:$0xff]  ;;  %v142_v23 = vld [vmem:[%s958_s3 + $0x68] sm:$0xff] }
  0x19   :  { %518 = vmatpush1.bf16.msra.mxu1 %v517_v13  ;;  %v144_v24 = vld [vmem:[%s958_s3 + $0x78] sm:$0xff]  ;;  %v525_v25 = vpack.c.bf16 %v139_v22, %v137_v21  ;;  %v141_v27 = vld [vmem:[%s958_s3 + $0x60] sm:$0xff]  ;;  %v143_v28 = vld [vmem:[%s958_s3 + $0x70] sm:$0xff] }
  0x1a   :  { %510 = vmatmul.mubr.msk.f32.vlgmr.msra.gmra.mrb[0].mxu0 %vm54_vm1, %v44_v5  ;;  %520 = vmatprep.subr.bf16.mxu1 %v519_v14  ;;  %v527_v26 = vpack.c.bf16 %v144_v24, %v142_v23  ;;  %v146_v29 = vld [vmem:[%s958_s3 + $0x88] sm:$0xff]  ;;  %v148_v30 = vld [vmem:[%s958_s3 + $0x98] sm:$0xff]  ;;  %v529_v31 = vpack.c.bf16 %v143_v28, %v141_v27  ;;  %v145_v33 = vld [vmem:[%s958_s3 + $0x80] sm:$0xff] }
  0x1b   :  { %v531_v32 = vpack.c.bf16 %v148_v30, %v146_v29  ;;  %v147_v34 = vld [vmem:[%s958_s3 + $0x90] sm:$0xff]  ;;  %v150_v35 = vld [vmem:[%s958_s3 + $0xa8] sm:$0xff]  ;;  %v152_v36 = vld [vmem:[%s958_s3 + $0xb8] sm:$0xff] }
  0x1c   :  { %v533_v37 = vpack.c.bf16 %v147_v34, %v145_v33  ;;  %v535_v38 = vpack.c.bf16 %v152_v36, %v150_v35  ;;  %v149_v39 = vld [vmem:[%s958_s3 + $0xa0] sm:$0xff]  ;;  %v151_v40 = vld [vmem:[%s958_s3 + $0xb0] sm:$0xff]  ;;  %v154_v41 = vld [vmem:[%s958_s3 + $0xc8] sm:$0xff] }
  0x1d   :  { %522 = vmatpush1.bf16.msra.mxu1 %v521_v19  ;;  %v156_v42 = vld [vmem:[%s958_s3 + $0xd8] sm:$0xff]  ;;  %v537_v43 = vpack.c.bf16 %v151_v40, %v149_v39  ;;  %v153_v45 = vld [vmem:[%s958_s3 + $0xc0] sm:$0xff]  ;;  %v155_v46 = vld [vmem:[%s958_s3 + $0xd0] sm:$0xff] }
  0x1e   :  { %524 = vmatprep.subr.bf16.mxu1 %v523_v20  ;;  %v539_v44 = vpack.c.bf16 %v156_v42, %v154_v41  ;;  %v541_v47 = vpack.c.bf16 %v155_v46, %v153_v45  ;;  %v158_v48 = vld [vmem:[%s958_s3 + $0xe8] sm:$0xff]  ;;  %v160_v49 = vld [vmem:[%s958_s3 + $0xf8] sm:$0xff]  ;;  %v157_v51 = vld [vmem:[%s958_s3 + $0xe0] sm:$0xff] }
  0x1f   :  { %v543_v50 = vpack.c.bf16 %v160_v49, %v158_v48  ;;  %v159_v52 = vld [vmem:[%s958_s3 + $0xf0] sm:$0xff]  ;;  %v262_v54 = vld [vmem:[%s960_s5 + $0x80] sm:$0xff]  ;;  %v263_v55 = vld [vmem:[%s960_s5 + $0x88] sm:$0xff]  ;;  %s454_s3 = sshll.u32 %s652_s20, 4  ;;  %s455_s3 = int_to_ptr.vmem [resolvable:$true] %s454_s3 }
  0x20   :  { %v545_v53 = vpack.c.bf16 %v159_v52, %v157_v51  ;;  %v246_v56 = vld [vmem:[%s960_s5] sm:$0xff]  ;;  %v547_v57 = vpack.c.bf16 %v263_v55, %v262_v54  ;;  %v247_v58 = vld [vmem:[%s960_s5 + $0x8] sm:$0xff]  ;;  %v264_v59 = vld [vmem:[%s960_s5 + $0x90] sm:$0xff]  ;;  %p625_p9 = scmp.lt.s32.totalorder %s455_s3, %s455_s3 }
  0x21   :  { %526 = vmatpush1.bf16.msra.mxu1 %v525_v25  ;;  %v265_v60 = vld [vmem:[%s960_s5 + $0x98] sm:$0xff]  ;;  %v549_v61 = vpack.c.bf16 %v247_v58, %v246_v56  ;;  %v248_v63 = vld [vmem:[%s960_s5 + $0x10] sm:$0xff]  ;;  %v266_v2 = vld [vmem:[%s960_s5 + $0xa0] sm:$0xff] }
  0x22   :  { %528 = vmatprep.subr.bf16.mxu1 %v527_v26  ;;  %v551_v62 = vpack.c.bf16 %v265_v60, %v264_v59  ;;  %v249_v0 = vld [vmem:[%s960_s5 + $0x18] sm:$0xff]  ;;  %548 = vmatprep.subr.bf16.mxu0 %v547_v57  ;;  %v267_v3 = vld [vmem:[%s960_s5 + $0xa8] sm:$0xff]  ;;  %v250_v6 = vld [vmem:[%s960_s5 + $0x20] sm:$0xff] }
  0x23   :  { %550 = vmatpush3.bf16.msra.mxu0 %v549_v61  ;;  %v553_v4 = vpack.c.bf16 %v249_v0, %v248_v63  ;;  %v555_v5 = vpack.c.bf16 %v267_v3, %v266_v2  ;;  %v251_v7 = vld [vmem:[%s960_s5 + $0x28] sm:$0xff]  ;;  %v268_v8 = vld [vmem:[%s960_s5 + $0xb0] sm:$0xff]  ;;  %v269_v9 = vld [vmem:[%s960_s5 + $0xb8] sm:$0xff] }
  0x24   :  { %552 = vmatprep.subr.bf16.mxu0 %v551_v62  ;;  %v557_v10 = vpack.c.bf16 %v251_v7, %v250_v6  ;;  %v559_v11 = vpack.c.bf16 %v269_v9, %v268_v8  ;;  %v252_v12 = vld [vmem:[%s960_s5 + $0x30] sm:$0xff]  ;;  %v253_v13 = vld [vmem:[%s960_s5 + $0x38] sm:$0xff]  ;;  %v270_v14 = vld [vmem:[%s960_s5 + $0xc0] sm:$0xff] }
  0x25   :  { %530 = vmatpush1.bf16.msra.mxu1 %v529_v31  ;;  %v271_v15 = vld [vmem:[%s960_s5 + $0xc8] sm:$0xff]  ;;  %v561_v16 = vpack.c.bf16 %v253_v13, %v252_v12  ;;  %v254_v18 = vld [vmem:[%s960_s5 + $0x40] sm:$0xff]  ;;  %v272_v20 = vld [vmem:[%s960_s5 + $0xd0] sm:$0xff] }
  0x26   :  { %532 = vmatprep.subr.bf16.mxu1 %v531_v32  ;;  %v563_v17 = vpack.c.bf16 %v271_v15, %v270_v14  ;;  %v255_v19 = vld [vmem:[%s960_s5 + $0x48] sm:$0xff]  ;;  %v273_v21 = vld [vmem:[%s960_s5 + $0xd8] sm:$0xff]  ;;  %v256_v24 = vld [vmem:[%s960_s5 + $0x50] sm:$0xff] }
  0x27   :  { %554 = vmatpush3.bf16.msra.mxu0 %v553_v4  ;;  %v565_v22 = vpack.c.bf16 %v255_v19, %v254_v18  ;;  %v567_v23 = vpack.c.bf16 %v273_v21, %v272_v20  ;;  %v257_v25 = vld [vmem:[%s960_s5 + $0x58] sm:$0xff]  ;;  %v274_v26 = vld [vmem:[%s960_s5 + $0xe0] sm:$0xff]  ;;  %v275_v27 = vld [vmem:[%s960_s5 + $0xe8] sm:$0xff] }
  0x28   :  { %556 = vmatprep.subr.bf16.mxu0 %v555_v5  ;;  %v569_v28 = vpack.c.bf16 %v257_v25, %v256_v24  ;;  %v571_v29 = vpack.c.bf16 %v275_v27, %v274_v26  ;;  %v463_v30 = vld [vmem:[%s957_s2] ss:$0 sm:$0xff]  ;;  %v259_v36 = vld [vmem:[%s960_s5 + $0x68] sm:$0xff]  ;;  %v277_v39 = vld [vmem:[%s960_s5 + $0xf8] sm:$0xff] }
  0x29   :  { %534 = vmatpush1.bf16.msra.mxu1 %v533_v37  ;;  %v258_v35 = vld [vmem:[%s960_s5 + $0x60] sm:$0xff]  ;;  %v261_v41 = vld [vmem:[%s960_s5 + $0x78] sm:$0xff]  ;;  %v363_v62 = vld [vmem:[%s962_s7 + $0x8] sm:$0xff] }
  0x2a   :  { %536 = vmatprep.subr.bf16.mxu1 %v535_v38  ;;  %v573_v37 = vpack.c.bf16 %v259_v36, %v258_v35  ;;  %v276_v38 = vld [vmem:[%s960_s5 + $0xf0] sm:$0xff]  ;;  %v161_v46 = vld [vmem:[%s959_s4] sm:$0x3]  ;;  %v365_v63 = vld [vmem:[%s962_s7 + $0x18] sm:$0xff] }
  0x2b   :  { %558 = vmatpush3.bf16.msra.mxu0 %v557_v10  ;;  %v575_v40 = vpack.c.bf16 %v277_v39, %v276_v38  ;;  %v465_v58 = vld [vmem:[%s961_s6] ss:$0 sm:$0xff]  ;;  %v579_v2 = vpack.c.bf16 %v365_v63, %v363_v62  ;;  %v364_v3 = vld [vmem:[%s962_s7 + $0x10] sm:$0xff]  ;;  %v367_v4 = vld [vmem:[%s962_s7 + $0x28] sm:$0xff] }
  0x2c   :  { %560 = vmatprep.subr.bf16.mxu0 %v559_v11  ;;  %v362_v0 = vld [vmem:[%s962_s7] sm:$0xff]  ;;  %v369_v5 = vld [vmem:[%s962_s7 + $0x38] sm:$0xff]  ;;  %v368_v9 = vld [vmem:[%s962_s7 + $0x30] sm:$0xff] }
  0x2d   :  { %538 = vmatpush1.bf16.msra.mxu1 %v537_v43  ;;  %v163_v43 = vlaneseq  ;;  %v581_v6 = vpack.c.bf16 %v364_v3, %v362_v0  ;;  %v583_v7 = vpack.c.bf16 %v369_v5, %v367_v4  ;;  %v366_v8 = vld [vmem:[%s962_s7 + $0x20] sm:$0xff]  ;;  %s620_s7 = scalar_lea.vmem %s455_s3, 128 }
  0x2e   :  { %540 = vmatprep.subr.bf16.mxu1 %v539_v44  ;;  %v585_v10 = vpack.c.bf16 %v368_v9, %v366_v8  ;;  %p621_p8 = scmp.ne.s32.totalorder %s455_s3, %s620_s7  ;;  %p626_p10 = scmp.lt.s32.totalorder %s620_s7, %s620_s7 }
  0x2f   :  { %562 = vmatpush3.bf16.msra.mxu0 %v561_v16  ;;  %v164_v44 = vshrl.u32 %v163_v43, 7 }
  0x30   :  { %564 = vmatprep.subr.bf16.mxu0 %v563_v17  ;;  %p627_p11 = por %p626_p10, %p625_p9 }
  0x31   :  { %542 = vmatpush1.bf16.msra.mxu1 %v541_v47  ;;  %v165_v45 = vsub.s32 0, %v164_v44  ;;  %v169_v47 = vsub.s32 1, %v164_v44 }
  0x32   :  { %544 = vmatprep.subr.bf16.mxu1 %v543_v50  ;;  %p628_p12 = pnand %p627_p11, %p621_p8 }
  0x33   :  { %566 = vmatpush3.bf16.msra.mxu0 %v565_v22  ;;  %v166_v48 = vrot.slane %v161_v46, %v165_v45  ;;  %v170_v49 = vrot.slane %v161_v46, %v169_v47 }
  0x34   :  { %568 = vmatprep.subr.bf16.mxu0 %v567_v23 }
  0x35   :  { %546 = vmatpush1.bf16.msra.mxu1 %v545_v53 }
  0x36   :  { %580 = vmatprep.subr.bf16.mxu1 %v579_v2 }
  0x37   :  { %570 = vmatpush3.bf16.msra.mxu0 %v569_v28 }
  0x38   :  { %572 = vmatprep.subr.bf16.mxu0 %v571_v29 }
  0x3b   :  { %574 = vmatpush3.bf16.msra.mxu0 %v573_v37 }
  0x3c   :  { %576 = vmatprep.subr.bf16.mxu0 %v575_v40 }
  0xed   :  { %v124_v31 = vpop.f32.mrb[0].mxu0 }
  0xee   :  { %v125_v32 = vadd.f32 %v463_v30, %v124_v31  ;;  %v511_v33 = vpop.f32.mrb[1].mxu0 }
  0xf0   :  { %v128_v34 = vmax.f32 %v125_v32, 0.0 }
  0xf2   :  { %238 = vmatmul.mubr.f32.vlgmr.msra.gmra.mrb[0].mxu1 %v128_v34 }
  0xf3   :  { %437 = vmatprep.mubr.f32.mxu1 %v651_v1  ;;  %v260_v1 = vld [vmem:[%s960_s5 + $0x70] sm:$0xff]  ;;  %582 = vmatpush1.bf16.msra.mxu1 %v581_v6 }
  0xf4   :  { %v577_v42 = vpack.c.bf16 %v261_v41, %v260_v1  ;;  %584 = vmatprep.subr.bf16.mxu1 %v583_v7 }
  0xf6   :  { %578 = vmatpush3.bf16.msra.mxu0 %v577_v42 }
  0xf7   :  { %586 = vmatpush1.bf16.msra.mxu1 %v585_v10 }
 0x1c5   :  { %v239_v50 = vpop.f32.mrb[0].mxu1 }
 0x1c6   :  { %v240_v51 = vadd.f32 %v239_v50, %v166_v48  ;;  %v241_v52 = vpop.f32.mrb[1].mxu1 }
 0x1c7   :  { %v242_v53 = vadd.f32 %v241_v52, %v170_v49 }
 0x1c8   :  { %v244_v55 = vmax.f32 %v240_v51, 0.0 }
 0x1c9   :  { %v245_v54 = vmax.f32 %v242_v53, 0.0 }
 0x1cb   :  { %349 = vmatprep.mubr.f32.mxu0 %v245_v54 }
 0x1cc   :  { %350 = vmatmul.mubr.f32.vlgmr.msra.gmra.mrb[2].mxu0 %v244_v55 }
 0x29f   :  { %v502_v56 = vpop.f32.mrb[2].mxu0 }
 0x2a0   :  { %v503_v57 = vpop.f32.mrb[3].mxu0 }
 0x2a1   :  { %v504_v59 = vadd.f32 %v503_v57, %v502_v56 }
 0x2a3   :  { %v352_v60 = vadd.f32 %v504_v59, %v465_v58 }
 0x2a5   :  { %v356_v61 = vsel %vm355_vm2, %v352_v60, -inf }
 0x2a6   :  { %357 = vmax.xlane.f32.xlu0 %v356_v61 }
 0x333   :  { %v358_v11 = vpop.xlane.xlu0 %357 }
 0x334   :  { %v359_v12 = vsub.f32 %v352_v60, %v358_v11 }
 0x336   :  { %v360_v13 = vmul.f32 1.442695, %v359_v12 }
 0x338   :  { %594 = vpow2.f32 %v360_v13 }
 0x342   :  { %v595_v14 = vpop.eup %594 }
 0x343   :  { %466 = vmatmul.mubr.msk.f32.vlgmr.msra.gmra.mrb[2].mxu1 %vm355_vm2, %v595_v14 }
 0x416   :  { %v439_v15 = vpop.f32.mrb[2].mxu1 }
 0x417   :  { %v441_v16 = vpop.f32.mrb[3].mxu1 }
 0x418   :  { %v444_v17 = vmax.f32 %v441_v16, 1e-30 }
 0x41a   :  { %596 = vrcp.f32 %v444_v17 }
 0x424   :  { %v597_v18 = vpop.eup %596 }
 0x425   :  { %v446_v19 = vmul.f32 %v597_v18, %v439_v15 }
 0x427   :  { %447 = vst [vmem:[#allocation5] sm:$0xff] %v446_v19 }
 0x428   :  { %631 = shalt.err (!%p628_p12)
}
 0x429   :  { %s632_s22 = scalar_lea.hbm %s963_s8, 128 }
 0x42a   :  { %p633_p13 = scmp.ne.s32.totalorder %s963_s8, %s632_s22  ;;  %p636_p0 = scmp.lt.u32.totalorder %s632_s22, %s963_s8 }
 0x42c   :  { %p638_p1 = pnand %p636_p0, %p633_p13 }
 0x42e   :  { %641 = shalt.err (!%p638_p1)
}
 0x42f   :  { %457 = dma.vmem_to_hbm [thread:$0]  %s455_s3, 128, %s963_s8, [#allocation4]  }
 0x430   :  { %644 = dma.done.wait [#allocation4], 128  }
 0x431   :  { %645 = vsyncadd [#allocation4], 4294967168 }
 0x432   :  { %461 = vsyncpa [#allocation3], 1 }
 0x433   :  { %462 = vsyncpa [#allocation4], 1 }

</bundles_post_ra>
